<compile_context>
chip_gen: v6e
topology: v6e:2x2x1
jax: 0.10.0
libtpu: 0.0.40
codegen_flags: <defaults>
</compile_context>

<pallas_src>
import functools

import jax
import jax.numpy as jnp
from jax.experimental import pallas as pl
from jax.experimental.pallas import tpu as pltpu

# Heads whose name is in this set are skipped (sequence-labelling tasks get no dense
# head), mirroring the constant referenced by the PyTorch module.
SEQUENCE_CLASSIFICATION_TASK_NAMES = {"ner", "sequence_tagging"}

_LANE = 128
_SUBLANE = 8
_TM_CAP = 512                      # preferred batch tile (rows)
_TN_CAP = 512                      # preferred packed-class tile (lanes)
_TK_CAP = 2048                     # reduction tile for the (rare) K-tiled fallback
_VMEM_LIMIT = 48 * 1024 * 1024     # scoped VMEM limit: fits v7x's 64 MiB physical VMEM
_VMEM_BUDGET = 40 * 1024 * 1024    # target double-buffered working set (headroom left)


def _round_up(x, m):
    return ((x + m - 1) // m) * m


def _next_pow2(x):
    return 1 << (max(int(x), 1) - 1).bit_length()


def _batch_tiling(B, tm_cap):
    """Pick (tm, Bp) with tm | Bp, tm % 8 == 0, Bp >= B.

    Padded batch sizes are bucketed (powers of two up to the tile cap) so a changing
    batch size does not trigger a fresh Mosaic compile for every 8-aligned B; above
    the cap the rows are split evenly over ceil(B/cap) tiles to minimize padding.
    """
    tm_cap = max(_SUBLANE, (tm_cap // _SUBLANE) * _SUBLANE)
    Bq = _round_up(max(B, 1), _SUBLANE)
    if Bq <= tm_cap:
        Bp = max(Bq, min(_next_pow2(Bq), tm_cap))
        # v7x megacore: give the (parallel) batch axis >= 2 steps when there is enough
        # work so both TensorCores are fed.  No-op on v5e/v6e (single TC).
        if Bp >= 512 and (Bp // 2) % _SUBLANE == 0:
            return Bp // 2, Bp
        return Bp, Bp
    n_i = -(-Bq // tm_cap)                       # ceil
    tm = _round_up(-(-Bq // n_i), _SUBLANE)      # spread rows evenly -> minimal padding
    return tm, tm * n_i


def _fast_tm_cap(D, tn):
    """Largest batch tile for the resident-W fast path, or None if W can't stay in VMEM."""
    w_bytes = 2 * 4 * tn * (D + 1)               # packed W + bias, double buffered
    per_row = 2 * 4 * (D + tn)                   # one x row + one out row, double buffered
    room = _VMEM_BUDGET - w_bytes
    if room < per_row * _SUBLANE:
        return None
    return min(_TM_CAP, room // per_row)


def _pick_tk(D):
    """Reduction tile for the fallback: prefer a 128-aligned divisor of D (no K pad)."""
    best = None
    t = _LANE
    while t <= min(D, _TK_CAP):
        if D % t == 0:
            best = t
        t += _LANE
    if best is not None:
        return best, D
    tk = min(_round_up(D, _LANE), _TK_CAP)
    return tk, _round_up(D, tk)


# ---------------------------------------------------------------------------
# Fast path: W resident in VMEM, full reduction axis inside one block.
# ---------------------------------------------------------------------------
def _fused_heads_kernel(x_ref, w_ref, b_ref, o_ref):
    # x_ref: (tm, D)   w_ref: (D, tn)   b_ref: (1, tn)   o_ref: (tm, tn)
    o_ref[...] = (
        jnp.dot(x_ref[...], w_ref[...], preferred_element_type=jnp.float32)
        + b_ref[...].astype(jnp.float32)
    ).astype(o_ref.dtype)


@functools.partial(jax.jit, static_argnames=("tm", "tn"))
def _fused_linear_fast(x_pad, w_packed, b_packed, *, tm, tn):
    """x_pad: (Bp, D), w_packed: (D, Np), b_packed: (1, Np) -> (Bp, Np)."""
    Bp, D = x_pad.shape
    Np = w_packed.shape[1]
    grid = (Bp // tm, Np // tn)   # j innermost: x tile DMA'd exactly once per batch tile
    return pl.pallas_call(
        _fused_heads_kernel,
        out_shape=jax.ShapeDtypeStruct((Bp, Np), x_pad.dtype),
        grid_spec=pltpu.PrefetchScalarGridSpec(
            num_scalar_prefetch=0,
            grid=grid,
            in_specs=[
                pl.BlockSpec((tm, D), lambda i, j: (i, 0)),
                pl.BlockSpec((D, tn), lambda i, j: (0, j)),
                pl.BlockSpec((1, tn), lambda i, j: (0, j)),
            ],
            out_specs=pl.BlockSpec((tm, tn), lambda i, j: (i, j)),
        ),
        compiler_params=pltpu.CompilerParams(
            dimension_semantics=("parallel", "parallel"),
            vmem_limit_bytes=_VMEM_LIMIT,
        ),
    )(x_pad, w_packed, b_packed)


# ---------------------------------------------------------------------------
# Fallback: K-tiled accumulation (only for very large D where W can't be resident).
# ---------------------------------------------------------------------------
def _fused_heads_ktiled_kernel(x_ref, w_ref, b_ref, o_ref, acc_ref):
    # x_ref: (tm, tk)  w_ref: (tk, tn)  b_ref: (1, tn)  o_ref: (tm, tn)
    k = pl.program_id(2)

    @pl.when(k == 0)
    def _init():
        # Fold the bias into the accumulator init (saves a full-tile add at finalize).
        acc_ref[...] = jnp.broadcast_to(
            b_ref[...].astype(jnp.float32), acc_ref.shape
        )

    acc_ref[...] += jnp.dot(
        x_ref[...], w_ref[...], preferred_element_type=jnp.float32
    )

    @pl.when(k == pl.num_programs(2) - 1)
    def _finalize():
        o_ref[...] = acc_ref[...].astype(o_ref.dtype)


@functools.partial(jax.jit, static_argnames=("tm", "tn", "tk"))
def _fused_linear_ktiled(x_pad, w_packed, b_packed, *, tm, tn, tk):
    Bp, Dp = x_pad.shape
    Np = w_packed.shape[1]
    grid = (Bp // tm, Np // tn, Dp // tk)        # reduction axis last
    return pl.pallas_call(
        _fused_heads_ktiled_kernel,
        out_shape=jax.ShapeDtypeStruct((Bp, Np), x_pad.dtype),
        grid_spec=pltpu.PrefetchScalarGridSpec(
            num_scalar_prefetch=0,
            grid=grid,
            in_specs=[
                pl.BlockSpec((tm, tk), lambda i, j, k: (i, k)),
                pl.BlockSpec((tk, tn), lambda i, j, k: (k, j)),
                pl.BlockSpec((1, tn), lambda i, j, k: (0, j)),
            ],
            out_specs=pl.BlockSpec((tm, tn), lambda i, j, k: (i, j)),
            scratch_shapes=[pltpu.VMEM((tm, tn), jnp.float32)],
        ),
        compiler_params=pltpu.CompilerParams(
            dimension_semantics=("parallel", "parallel", "arbitrary"),
            vmem_limit_bytes=_VMEM_LIMIT,
        ),
    )(x_pad, w_packed, b_packed)


# ---------------------------------------------------------------------------
# Module-equivalent wrapper
# ---------------------------------------------------------------------------
class AutoClassificationOutputHead:
    """JAX/Pallas port of the PyTorch AutoClassificationOutputHead.

    One Linear(input_dim, len(classvalues)) head per label-map entry (excluding
    sequence-classification tasks).  Forward returns a dict of per-head logits;
    all heads are computed by ONE fused Pallas matmul over the packed (D, N_total)
    weight, then sliced per head.
    """

    def __init__(self, input_dim, task_name, label_map, *, key):
        self.label_map = label_map
        self.task_name = task_name
        self.input_dim = input_dim

        self.head_names = [
            n for n in label_map if n not in SEQUENCE_CLASSIFICATION_TASK_NAMES
        ]

        # Per-head params (kept for reference/inspection) + packed layout.
        self.params = {}
        self._slices = {}
        ws, bs = [], []
        off = 0
        keys = jax.random.split(key, max(len(self.head_names), 1))
        bound = 1.0 / float(input_dim) ** 0.5  # nn.Linear-style U(-1/sqrt(fan_in), ...)
        for k_i, name in zip(keys, self.head_names):
            n_out = len(label_map[name])
            kw, kb = jax.random.split(k_i)
            w = jax.random.uniform(kw, (n_out, input_dim), jnp.float32, -bound, bound)
            b = jax.random.uniform(kb, (n_out,), jnp.float32, -bound, bound)
            w_t = w.T  # (D, n_out): pre-transposed so the kernel does x @ W_T directly
            self.params[name] = (w_t, b)
            ws.append(w_t)
            bs.append(b)
            self._slices[name] = (off, n_out)
            off += n_out
        self.n_total = off

        if not self.head_names:
            return

        D = input_dim
        w_packed = jnp.concatenate(ws, axis=1)           # (D, N_total)
        b_packed = jnp.concatenate(bs)                    # (N_total,)

        # Packed-class axis: pad ONCE at init to a lane multiple so the out_spec is
        # lane-dense (unmasked vst).  Padded class columns produce exact zeros/bias
        # junk that is sliced off before returning.
        self._tn = min(_round_up(self.n_total, _LANE), _TN_CAP)
        self._Np = _round_up(self.n_total, self._tn)
        pad_n = self._Np - self.n_total
        b_row = jnp.pad(b_packed, (0, pad_n)).reshape(1, self._Np)

        # Path selection is batch-independent: fast (resident-W) iff W fits VMEM budget.
        self._fast_cap = _fast_tm_cap(D, self._tn)
        if self._fast_cap is not None:
            # Fast path: no padding of the reduction axis at all.
            self.w_packed = jnp.pad(w_packed, ((0, 0), (0, pad_n)))      # (D, Np)
            self._tk, self._Dp = None, D
        else:
            # K-tiled fallback: pad D once (weights only) to a tk multiple.
            self._tk, self._Dp = _pick_tk(D)
            self.w_packed = jnp.pad(
                w_packed, ((0, self._Dp - D), (0, pad_n))
            )                                                            # (Dp, Np)
        self.b_packed = b_row

    def get_keys(self):
        return self.params.keys()

    def get_label_map(self):
        return self.label_map

    def __call__(self, x):
        if not self.head_names:
            return {}
        B, D = x.shape
        assert D == self.input_dim

        if self._fast_cap is not None:
            tm, Bp = _batch_tiling(B, self._fast_cap)
            x_pad = x if Bp == B else jnp.pad(x, ((0, Bp - B), (0, 0)))
            out = _fused_linear_fast(
                x_pad, self.w_packed, self.b_packed, tm=tm, tn=self._tn
            )
        else:
            tm, Bp = _batch_tiling(B, 256)
            x_pad = jnp.pad(x, ((0, Bp - B), (0, self._Dp - D)))
            out = _fused_linear_ktiled(
                x_pad, self.w_packed, self.b_packed,
                tm=tm, tn=self._tn, tk=self._tk,
            )

        # Slice the per-head logits (and drop batch/class padding) outside the kernel.
        return {
            name: out[:B, off : off + n]
            for name, (off, n) in self._slices.items()
        }


# ---------------------------------------------------------------------------
# Demo / self-check
# ---------------------------------------------------------------------------
if __name__ == "__main__":
    key = jax.random.PRNGKey(0)
    k_params, k_x = jax.random.split(key)

    batch, hidden = 2, 32
    label_map = {
        "intent": ["greet", "bye", "weather", "music", "alarm"],  # 5 classes
        "domain": ["smalltalk", "media", "utility"],              # 3 classes
        "ner": ["O", "B-LOC", "I-LOC"],                           # skipped head
    }

    head = AutoClassificationOutputHead(
        input_dim=hidden, task_name="nlu", label_map=label_map, key=k_params
    )

    x = jax.random.normal(k_x, (batch, hidden), jnp.float32)

    out = head(x)
    out = jax.tree_util.tree_map(jax.block_until_ready, out)

    # Reference check against plain JAX.  The kernel uses the default TPU f32 matmul
    # precision, so the reference does too (and tolerances are kept modest).
    ok = True
    for name, (w_t, b) in head.params.items():
        ref = jnp.dot(x, w_t) + b
        ok &= bool(jnp.allclose(out[name], ref, atol=1e-3, rtol=1e-3))
        assert out[name].shape == (batch, len(label_map[name]))

    assert "ner" not in out  # sequence task excluded, same as PyTorch module
    if ok:
        print("KERNEL_OK")
</pallas_src>

<mosaic_0001>
module attributes {stable_mosaic.version = 11 : i64} {
  func.func @_fused_heads_kernel(%arg0: i32, %arg1: i32, %arg2: memref<8x32xf32, #tpu.memory_space<vmem>>, %arg3: memref<32x128xf32, #tpu.memory_space<vmem>>, %arg4: memref<1x128xf32, #tpu.memory_space<vmem>>, %arg5: memref<8x128xf32, #tpu.memory_space<vmem>>) attributes {dimension_semantics = [#tpu.dimension_semantics<parallel>, #tpu.dimension_semantics<parallel>], iteration_bounds = array<i64: 1, 1>, scalar_prefetch = 0 : i64, scratch_operands = 0 : i64, tpu.core_type = #tpu.core_type<tc>, window_params = [{transform_indices = @transform_0, window_bounds = array<i64: 8, 32>}, {transform_indices = @transform_1, window_bounds = array<i64: 32, 128>}, {transform_indices = @transform_2, window_bounds = array<i64: 1, 128>}, {transform_indices = @transform_3, window_bounds = array<i64: 8, 128>}]} {
    %c0 = arith.constant 0 : index
    %c0_0 = arith.constant 0 : index
    %0 = vector.load %arg2[%c0, %c0_0] : memref<8x32xf32, #tpu.memory_space<vmem>>, vector<8x32xf32>
    %c0_1 = arith.constant 0 : index
    %c0_2 = arith.constant 0 : index
    %1 = vector.load %arg3[%c0_1, %c0_2] : memref<32x128xf32, #tpu.memory_space<vmem>>, vector<32x128xf32>
    %cst = arith.constant dense<0.000000e+00> : vector<8x128xf32>
    %2 = tpu.matmul %0, %1, %cst {dimension_numbers = #tpu.dot_dimension_numbers<[1], [0], [0], [1], [0, 0, 1, 1], [], []>} : vector<8x32xf32>, vector<32x128xf32>, vector<8x128xf32> -> vector<8x128xf32>
    %c0_3 = arith.constant 0 : index
    %c0_4 = arith.constant 0 : index
    %3 = vector.load %arg4[%c0_3, %c0_4] : memref<1x128xf32, #tpu.memory_space<vmem>>, vector<1x128xf32>
    %4 = vector.broadcast %3 : vector<1x128xf32> to vector<8x128xf32>
    %5 = arith.addf %2, %4 : vector<8x128xf32>
    %c0_5 = arith.constant 0 : index
    %c0_6 = arith.constant 0 : index
    %6 = vector.load %arg5[%c0_5, %c0_6] : memref<8x128xf32, #tpu.memory_space<vmem>>, vector<8x128xf32>
    tpu.vector_store %arg5[%c0_5, %c0_6], %5 {strides = array<i32>} : memref<8x128xf32, #tpu.memory_space<vmem>>, vector<8x128xf32>,
    return
  }
  func.func @transform_0(%arg0: i32, %arg1: i32) -> (i32, i32) {
    %c0_i32 = arith.constant 0 : i32
    %c0_i32_0 = arith.constant 0 : i32
    return %arg0, %c0_i32 : i32, i32
  }
  func.func @transform_1(%arg0: i32, %arg1: i32) -> (i32, i32) {
    %c0_i32 = arith.constant 0 : i32
    %c0_i32_0 = arith.constant 0 : i32
    return %c0_i32, %arg1 : i32, i32
  }
  func.func @transform_2(%arg0: i32, %arg1: i32) -> (i32, i32) {
    %c0_i32 = arith.constant 0 : i32
    %c0_i32_0 = arith.constant 0 : i32
    return %c0_i32, %arg1 : i32, i32
  }
  func.func @transform_3(%arg0: i32, %arg1: i32) -> (i32, i32) {
    %c0_i32 = arith.constant 0 : i32
    return %arg0, %arg1 : i32, i32
  }
}

</mosaic_0001>

<bundles_post_ra>
// kernel: _fused_linear_fast.1
= control target key start
LH: loop header
LB: loop body
LE: loop exit
PB: predicated region body
PF: predicated region fallthrough
CT: control target
= control target key end

     0   :  { %8 = vsyncpa [#allocation3], 0  ;;  %s274_s0 = inlined_call_operand.hbm [shape: f32[8,32], index: 0, kind: input, shape index: {}]   ;;  %s275_s1 = inlined_call_operand.hbm [shape: f32[32,128], index: 1, kind: input, shape index: {}]   ;;  %s276_s2 = inlined_call_operand.vmem [shape: f32[1,128], index: 2, kind: input, shape index: {}]   ;;  %s277_s3 = inlined_call_operand.hbm [shape: f32[8,128], index: 3, kind: output, shape index: {}]  }
   0x1   :  { %9 = vsyncpa [#allocation6], 0 }
   0x2   :  { %10 = vsyncpa [#allocation4], 0  ;;  %s235_s12 = smov [#allocation2]   ;;  %s236_s14 = smov [#allocation5]  }
   0x3   :  { %s17_s13 = sshll.u32 %s235_s12, 4  ;;  %s26_s15 = sshll.u32 %s236_s14, 4  ;;  %s18_s13 = int_to_ptr.vmem [resolvable:$true] %s17_s13  ;;  %s27_s15 = int_to_ptr.vmem [resolvable:$true] %s26_s15 }
   0x4   :  { %s177_s16 = scalar_lea.vmem %s18_s13, 128  ;;  %p182_p1 = scmp.lt.s32.totalorder %s18_s13, %s18_s13 }
   0x5   :  { %p178_p0 = scmp.ne.s32.totalorder %s18_s13, %s177_s16  ;;  %p183_p2 = scmp.lt.s32.totalorder %s177_s16, %s177_s16 }
   0x7   :  { %p184_p3 = por %p183_p2, %p182_p1 }
   0x9   :  { %p185_p4 = pnand %p184_p3, %p178_p0 }
   0xb   :  { %188 = shalt.err (!%p185_p4)
}
   0xc   :  { %20 = dma.hbm_to_vmem [thread:$0]  %s274_s0, 128, %s18_s13, [#allocation3]  }
   0xd   :  { %s197_s19 = scalar_lea.vmem %s27_s15, 512  ;;  %p202_p6 = scmp.lt.s32.totalorder %s27_s15, %s27_s15 }
   0xe   :  { %p198_p5 = scmp.ne.s32.totalorder %s27_s15, %s197_s19  ;;  %p203_p7 = scmp.lt.s32.totalorder %s197_s19, %s197_s19 }
  0x10   :  { %p204_p8 = por %p203_p7, %p202_p6 }
  0x12   :  { %p205_p9 = pnand %p204_p8, %p198_p5 }
  0x14   :  { %208 = shalt.err (!%p205_p9)
}
  0x15   :  { %s237_s20 = smov 128   ;;  %s238_s21 = smov 8  }
  0x16   :  { %32 = dma.hbm_to_vmem [thread:$0]  %s275_s1, 512, %s27_s15, [#allocation6], %s237_s20, %s237_s20, %s238_s21  }
  0x17   :  { %229 = dma.done.wait [#allocation3], 128  }
  0x18   :  { %230 = vsyncadd [#allocation3], 4294967168 }
  0x19   :  { %231 = dma.done.wait [#allocation6], 512  }
  0x1a   :  { %232 = vsyncadd [#allocation6], 4294966784  ;;  %v239_v0 = vmov 0.0   ;;  %vm240_vm0 = vmmov 0   ;;  %v45_v1 = vld [vmem:[#allocation5 + $0x18] sm:$0xff]  ;;  %v44_v2 = vld [vmem:[#allocation5 + $0x10] sm:$0xff] }
  0x1b   :  { %151 = vmatprep.subr.mxu0 %v239_v0  ;;  %159 = vmatprep.mubr.msk.f32.mxu0 %vm240_vm0, %v239_v0  ;;  %v43_v3 = vld [vmem:[#allocation5 + $0x8] sm:$0xff]  ;;  %v42_v4 = vld [vmem:[#allocation5] sm:$0xff]  ;;  %v41_v5 = vld [vmem:[#allocation2] sm:$0xff]  ;;  %vm53_vm1 = vcmask 261120   ;;  %s241_s24 = smov [#allocation7]  }
  0x1c   :  { %152 = vmatpush3.msra.mxu0 %v45_v1  ;;  %v144_v6 = vld [vmem:[%s276_s2] ss:$0 sm:$0xff]  ;;  %s134_s25 = sshll.u32 %s241_s24, 4  ;;  %s135_s25 = int_to_ptr.vmem [resolvable:$true] %s134_s25 }
  0x1d   :  { %153 = vmatprep.subr.mxu0 %v239_v0  ;;  %s209_s26 = scalar_lea.vmem %s135_s25, 128  ;;  %p214_p11 = scmp.lt.s32.totalorder %s135_s25, %s135_s25 }
  0x1e   :  { %154 = vmatpush3.msra.mxu0 %v44_v2  ;;  %p210_p10 = scmp.ne.s32.totalorder %s135_s25, %s209_s26  ;;  %p215_p12 = scmp.lt.s32.totalorder %s209_s26, %s209_s26 }
  0x1f   :  { %155 = vmatprep.subr.mxu0 %v239_v0 }
  0x20   :  { %156 = vmatpush3.msra.mxu0 %v43_v3  ;;  %p216_p13 = por %p215_p12, %p214_p11 }
  0x21   :  { %157 = vmatprep.subr.mxu0 %v239_v0 }
  0x22   :  { %158 = vmatpush3.msra.mxu0 %v42_v4  ;;  %p217_p0 = pnand %p216_p13, %p210_p10 }
  0x23   :  { %160 = vmatmul.mubr.msk.f32.vlgmr.msra.gmra.mxu0 %vm53_vm1, %v41_v5 }
  0xe3   :  { %v123_v7 = vpop.f32.mrf.mxu0 }
  0xe4   :  { %v124_v8 = vadd.f32 %v144_v6, %v123_v7 }
  0xe5   :  { %v161_v9 = vpop.f32.mrf.mxu0 }
  0xe6   :  { %127 = vst [vmem:[#allocation7] sm:$0xff] %v124_v8 }
  0xe7   :  { %220 = shalt.err (!%p217_p0)
}
  0xe8   :  { %137 = dma.vmem_to_hbm [thread:$0]  %s135_s25, 128, %s277_s3, [#allocation4]  }
  0xe9   :  { %233 = dma.done.wait [#allocation4], 128  }
  0xea   :  { %234 = vsyncadd [#allocation4], 4294967168 }
  0xeb   :  { %141 = vsyncpa [#allocation3], 1 }
  0xec   :  { %142 = vsyncpa [#allocation6], 1 }
  0xed   :  { %143 = vsyncpa [#allocation4], 1 }

</bundles_post_ra>
